<compile_context>
chip_gen: v6e
topology: v6e:2x2x1
jax: 0.10.0
libtpu: 0.0.40
codegen_flags: <defaults>
</compile_context>

<pallas_src>
import math
import functools

import jax
import jax.numpy as jnp
from jax.experimental import pallas as pl
from jax.experimental.pallas import tpu as pltpu

LN_EPS = 1e-5   # torch nn.LayerNorm default


def _vmem_limit_bytes():
    """~3/4 of physical VMEM, capped at 112 MiB: ~96 MiB on v5e/v6e, ~48 MiB on v7x."""
    cap = 64 * 1024 * 1024
    try:
        cap = getattr(pltpu.get_tpu_info(), "vmem_capacity_bytes", cap)
    except Exception:
        pass
    return int(min(cap * 3 // 4, 112 * 1024 * 1024))


VMEM_LIMIT = _vmem_limit_bytes()


def _choose_block_batch(batch, rows_per_sample, width, vmem_limit):
    """Largest divisor of `batch` such that (a) at least two batch tiles remain
    (v7x: keep both TensorCores busy), (b) the flattened f32 activation footprint
    stays well under the VMEM limit, preferring Bt*L >= 256 to fill the MXU."""
    act_budget = vmem_limit // 4
    best = 1
    for bt in range(1, batch + 1):
        if batch % bt:
            continue
        if batch >= 2 and batch // bt < 2:
            break                               # keep >= 2 batch tiles
        rows = bt * rows_per_sample
        if rows * (10 * width) * 4 > act_budget:   # resid + qkv + mlp intermediates
            break
        best = bt
        if rows >= 256:
            break
    return best


def _invariant_spec(shape):
    """BlockSpec for a grid-invariant operand: constant index_map (single DMA across
    the grid) and single buffering (pl.Buffered(1)) so the unused second pipeline
    buffer is not allocated.  Falls back to the default spec if unavailable."""
    nd = len(shape)
    index_map = lambda *_: (0,) * nd
    try:
        return pl.BlockSpec(shape, index_map, pipeline_mode=pl.Buffered(1))
    except Exception:
        return pl.BlockSpec(shape, index_map)


def _layernorm(x, w2d, b2d):
    # f32 LayerNorm over the last axis; x: (rows, E); w2d/b2d: (1, E)
    mu = jnp.mean(x, axis=-1, keepdims=True)
    var = jnp.mean(jnp.square(x - mu), axis=-1, keepdims=True)
    return (x - mu) * jax.lax.rsqrt(var + LN_EPS) * w2d + b2d


# ---------------------------------------------------------------------------
# Kernel 1: TokenEmbedding (circular Conv1d k=3, bias=False) fused with the
# start/stop token rows and the sinusoidal positional embedding.
#   y[t] = x[(t-1) mod L] @ W0 + x[t] @ W1 + x[(t+1) mod L] @ W2
# The three taps are a single (rows, 3C) x (3C, E) dot.
# ---------------------------------------------------------------------------
def _embed_kernel(x_ref, w_ref, start_ref, stop_ref, pos_ref, o_ref):
    bt, L, C = x_ref.shape
    E = w_ref.shape[1]
    x = x_ref[...]                                               # (bt, L, C) f32
    # circular shifts along the sequence axis (built in VMEM, no HBM unfold)
    x_prev = jnp.concatenate([x[:, L - 1:, :], x[:, :L - 1, :]], axis=1)
    x_next = jnp.concatenate([x[:, 1:, :], x[:, :1, :]], axis=1)
    xcat = jnp.concatenate([x_prev, x, x_next], axis=-1).astype(jnp.bfloat16)
    xm = xcat[0] if bt == 1 else xcat.reshape(bt * L, 3 * C)     # (bt*L, 3C)
    y = jnp.dot(xm, w_ref[...],
                preferred_element_type=jnp.float32).reshape(bt, L, E)
    pos = pos_ref[...]                                           # (L+2, E) f32
    # fused start/stop rows + positional embedding (dropout is identity at inference)
    o_ref[:, 1:L + 1, :] = y + pos[1:L + 1, :][None]
    o_ref[:, 0:1, :] = jnp.broadcast_to(
        (start_ref[...] + pos[0:1, :]).reshape(1, 1, E), (bt, 1, E))
    o_ref[:, L + 1:L + 2, :] = jnp.broadcast_to(
        (stop_ref[...] + pos[L + 1:L + 2, :]).reshape(1, 1, E), (bt, 1, E))


def embed_call(x, params, *, block_batch):
    B, L, C = x.shape
    w = params['tok_w_cat']
    E = w.shape[1]
    pos = params['pos_emb']
    return pl.pallas_call(
        _embed_kernel,
        grid=(B // block_batch,),
        out_shape=jax.ShapeDtypeStruct((B, L + 2, E), jnp.float32),
        in_specs=[pl.BlockSpec((block_batch, L, C), lambda b: (b, 0, 0)),
                  _invariant_spec(w.shape),
                  _invariant_spec(params['start_token'].shape),
                  _invariant_spec(params['stop_token'].shape),
                  _invariant_spec(pos.shape)],
        out_specs=pl.BlockSpec((block_batch, L + 2, E), lambda b: (b, 0, 0)),
        compiler_params=pltpu.CompilerParams(
            dimension_semantics=("parallel",),
            vmem_limit_bytes=VMEM_LIMIT),
    )(x, w, params['start_token'], params['stop_token'], pos)


# ---------------------------------------------------------------------------
# Kernel 2: the full CLIP transformer (all ResidualAttentionBlocks) in one call.
# grid = (batch_tiles, layers); residual stream kept in a VMEM scratch across the
# layer axis; only the last-token rows are written to HBM at the final layer.
# ---------------------------------------------------------------------------
_LAYER_WEIGHT_ORDER = ('ln1_w', 'ln1_b', 'wqkv', 'bqkv', 'wo', 'bo',
                       'ln2_w', 'ln2_b', 'wfc', 'bfc', 'wproj', 'bproj')


def _transformer_kernel(x_ref, ln1w_ref, ln1b_ref, wqkv_ref, bqkv_ref, wo_ref, bo_ref,
                        ln2w_ref, ln2b_ref, wfc_ref, bfc_ref, wproj_ref, bproj_ref,
                        o_ref, resid_ref, *, num_heads):
    layer = pl.program_id(1)
    bt, L, E = resid_ref.shape
    H = num_heads
    D = E // H
    scale = 1.0 / math.sqrt(D)

    # layer 0: pull this batch tile's residual stream into the persistent scratch
    @pl.when(layer == 0)
    def _():
        resid_ref[...] = x_ref[...]

    # flattened (bt*L, E) f32 view: fills the MXU M-dimension for the projections
    x = resid_ref[0] if bt == 1 else resid_ref[...].reshape(bt * L, E)

    # causal mask built in VMEM (cheap VALU filler; no (L,L) HBM DMA per layer)
    rows_i = jax.lax.broadcasted_iota(jnp.int32, (L, L), 0)
    cols_i = jax.lax.broadcasted_iota(jnp.int32, (L, L), 1)
    allowed = cols_i <= rows_i

    # ---- attention sub-block: x = x + out_proj(MHA(LN1(x), causal mask)) ----
    xn = _layernorm(x, ln1w_ref[0], ln1b_ref[0])
    qkv = jnp.dot(xn.astype(jnp.bfloat16), wqkv_ref[0],
                  preferred_element_type=jnp.float32) + bqkv_ref[0]
    # hoisted 1/sqrt(D): scale q once instead of every (L,L) score matrix
    q = (qkv[:, 0 * E:1 * E] * scale).astype(jnp.bfloat16)
    k = qkv[:, 1 * E:2 * E].astype(jnp.bfloat16)
    v = qkv[:, 2 * E:3 * E].astype(jnp.bfloat16)
    wo = wo_ref[0]                                               # (E, E) bf16

    per_sample = []
    for b in range(bt):                                          # static loops
        if bt == 1:
            qb, kb, vb = q, k, v
        else:
            qb = q[b * L:(b + 1) * L]
            kb = k[b * L:(b + 1) * L]
            vb = v[b * L:(b + 1) * L]
        acc = jnp.zeros((L, E), jnp.float32)
        for h in range(H):
            qh = qb[:, h * D:(h + 1) * D]
            kh = kb[:, h * D:(h + 1) * D]
            vh = vb[:, h * D:(h + 1) * D]
            s = jax.lax.dot_general(qh, kh, (((1,), (1,)), ((), ())),
                                    preferred_element_type=jnp.float32)
            s = jnp.where(allowed, s, -jnp.inf)
            s = s - jnp.max(s, axis=-1, keepdims=True)
            e = jnp.exp(s)
            inv = pl.reciprocal(jnp.sum(e, axis=-1, keepdims=True), approx=True)
            p = (e * inv).astype(jnp.bfloat16)
            ctx = jnp.dot(p, vh, preferred_element_type=jnp.float32).astype(jnp.bfloat16)
            # out_proj folded into the head loop: no sub-128-lane masked stores
            acc = acc + jnp.dot(ctx, wo[h * D:(h + 1) * D, :],
                                preferred_element_type=jnp.float32)
        per_sample.append(acc)
    attn = per_sample[0] if bt == 1 else jnp.concatenate(per_sample, axis=0)
    x = x + attn + bo_ref[0]

    # ---- MLP sub-block: x = x + c_proj(QuickGELU(c_fc(LN2(x)))) ----
    xn2 = _layernorm(x, ln2w_ref[0], ln2b_ref[0])
    hdn = jnp.dot(xn2.astype(jnp.bfloat16), wfc_ref[0],
                  preferred_element_type=jnp.float32) + bfc_ref[0]
    # CLIP QuickGELU: x * sigmoid(1.702 x); divide goes to the EUP via approx recip
    hdn = hdn * pl.reciprocal(1.0 + jnp.exp(-1.702 * hdn), approx=True)
    y = jnp.dot(hdn.astype(jnp.bfloat16), wproj_ref[0],
                preferred_element_type=jnp.float32) + bproj_ref[0]
    x = x + y

    if bt == 1:
        resid_ref[0] = x
    else:
        resid_ref[...] = x.reshape(bt, L, E)

    # only the last token feeds trans_act / ln_final / head: emit just that row
    @pl.when(layer == pl.num_programs(1) - 1)
    def _():
        o_ref[...] = resid_ref[:, L - 1:L, :]


def transformer_call(h, stacked, *, num_heads, block_batch):
    B, L, E = h.shape
    n_layers = stacked['wqkv'].shape[0]
    x_spec = pl.BlockSpec((block_batch, L, E), lambda b, l: (b, 0, 0))
    # per-layer weights: block index follows the layer grid coordinate, so layer l+1
    # weight DMAs pipeline (double-buffered) behind layer l compute
    w_specs = [pl.BlockSpec((1,) + tuple(stacked[name].shape[1:]),
                            lambda b, l: (l, 0, 0))
               for name in _LAYER_WEIGHT_ORDER]
    return pl.pallas_call(
        functools.partial(_transformer_kernel, num_heads=num_heads),
        grid=(B // block_batch, n_layers),
        out_shape=jax.ShapeDtypeStruct((B, 1, E), jnp.float32),
        in_specs=[x_spec] + w_specs,
        out_specs=pl.BlockSpec((block_batch, 1, E), lambda b, l: (b, 0, 0)),
        scratch_shapes=[pltpu.VMEM((block_batch, L, E), jnp.float32)],
        compiler_params=pltpu.CompilerParams(
            dimension_semantics=("parallel", "arbitrary"),
            vmem_limit_bytes=VMEM_LIMIT),
    )(h, *[stacked[name] for name in _LAYER_WEIGHT_ORDER])


# ---------------------------------------------------------------------------
# Kernel 3: ln_final + classification head on the (already GELU'd) last token.
# Output is lane-dense (num_classes padded to 128); wrapper slices it back.
# ---------------------------------------------------------------------------
def _head_kernel(x_ref, lnw_ref, lnb_ref, w_ref, b_ref, o_ref):
    xn = _layernorm(x_ref[...], lnw_ref[...], lnb_ref[...])     # (B, E) f32
    o_ref[...] = jnp.dot(xn.astype(jnp.bfloat16), w_ref[...],
                         preferred_element_type=jnp.float32) + b_ref[...]


def head_call(h_last, params):
    B, _ = h_last.shape
    Cp = params['head_w_pad'].shape[1]
    vmem = lambda: pl.BlockSpec(memory_space=pltpu.MemorySpace.VMEM)
    out = pl.pallas_call(
        _head_kernel,
        out_shape=jax.ShapeDtypeStruct((B, Cp), jnp.float32),
        in_specs=[vmem() for _ in range(5)],
        out_specs=vmem(),
        compiler_params=pltpu.CompilerParams(vmem_limit_bytes=VMEM_LIMIT),
    )(h_last, params['lnf_w'], params['lnf_b'],
      params['head_w_pad'], params['head_b_pad'])
    return out[:, :params['num_classes']]


# ---------------------------------------------------------------------------
# Full forward (glue in JAX, hot paths in Pallas)
# ---------------------------------------------------------------------------
def clipfcls_forward(x, params, *, num_heads):
    B, seq, _ = x.shape
    E = params['tok_w_cat'].shape[1]
    L_tot = seq + 2
    bt = _choose_block_batch(B, L_tot, E, VMEM_LIMIT)

    # is_reduce_time == False (reduce_ratio=1): conv_reduce branch statically skipped.
    # Kernel 1: circular-conv token embedding + start/stop tokens + pos-emb (fused).
    h = embed_call(x, params, block_batch=bt)                       # (B, L_tot, E)

    # Kernel 2: all transformer layers in one pallas_call; emits last-token rows only.
    last = transformer_call(h, params['layers_stacked'],
                            num_heads=num_heads, block_batch=bt)    # (B, 1, E)

    # trans_act = nn.GELU() (exact).  GELU / ln_final are per-token, so applying them
    # to the last token only gives identical logits to the reference.
    # TODO(synk): exact-erf GELU kept as one tiny XLA op on (B, E) rather than
    # in-kernel (Mosaic erf lowering not relied upon).
    h_last = jax.nn.gelu(last[:, 0, :], approximate=False)
    return head_call(h_last, params)


# ---------------------------------------------------------------------------
# Deterministic parameter init (synthetic; module shapes).  Matmul operands are
# stored bf16; LN params / biases / pos-emb stay f32.
# TODO(synk): initialize_parameters() loads pretrained CLIP ViT-B/32 transformer
#             weights via clip.load(); replaced by deterministic random init.
# ---------------------------------------------------------------------------
def init_params(key, *, input_dim, width, layers, num_classes, seq_len, token_kernel=3):
    L_tot = seq_len + 2
    keys = jax.random.split(key, 3)

    def nrm(k, shape, scale=0.02):
        return scale * jax.random.normal(k, shape, dtype=jnp.float32)

    params = {'num_classes': num_classes}

    # TokenEmbedding Conv1d weight: torch shape (width, input_dim, kernel), bias=False.
    # Tap k multiplies x[(t + k - 1) mod L]; taps pre-concatenated along the
    # contraction axis into a single (3*C, width) bf16 slab (one fused MXU dot).
    tok_w = nrm(keys[0], (width, input_dim, token_kernel))
    params['tok_w_cat'] = jnp.concatenate(
        [jnp.transpose(tok_w[:, :, kk], (1, 0)) for kk in range(token_kernel)],
        axis=0).astype(jnp.bfloat16)

    params['start_token'] = jnp.zeros((1, width), jnp.float32)   # nn.Parameter zeros
    params['stop_token'] = jnp.zeros((1, width), jnp.float32)

    # sinusoidal PositionalEmbedding
    pos = jnp.arange(L_tot, dtype=jnp.float32)[:, None]
    div = jnp.exp(jnp.arange(0, width, 2, dtype=jnp.float32)
                  * (-math.log(10000.0) / width))
    pe = jnp.zeros((L_tot, width), jnp.float32)
    pe = pe.at[:, 0::2].set(jnp.sin(pos * div))
    pe = pe.at[:, 1::2].set(jnp.cos(pos * div))
    params['pos_emb'] = pe

    # Per-layer weights stacked on a leading `layers` axis (one fused pallas_call).
    lk = jax.random.split(keys[1], 4)
    params['layers_stacked'] = dict(
        ln1_w=jnp.ones((layers, 1, width), jnp.float32),
        ln1_b=jnp.zeros((layers, 1, width), jnp.float32),
        wqkv=nrm(lk[0], (layers, width, 3 * width)).astype(jnp.bfloat16),   # in_proj_weight.T
        bqkv=jnp.zeros((layers, 1, 3 * width), jnp.float32),
        wo=nrm(lk[1], (layers, width, width)).astype(jnp.bfloat16),         # out_proj.weight.T
        bo=jnp.zeros((layers, 1, width), jnp.float32),
        ln2_w=jnp.ones((layers, 1, width), jnp.float32),
        ln2_b=jnp.zeros((layers, 1, width), jnp.float32),
        wfc=nrm(lk[2], (layers, width, 4 * width)).astype(jnp.bfloat16),    # c_fc.weight.T
        bfc=jnp.zeros((layers, 1, 4 * width), jnp.float32),
        wproj=nrm(lk[3], (layers, 4 * width, width)).astype(jnp.bfloat16),  # c_proj.weight.T
        bproj=jnp.zeros((layers, 1, width), jnp.float32),
    )

    params['lnf_w'] = jnp.ones((1, width), jnp.float32)
    params['lnf_b'] = jnp.zeros((1, width), jnp.float32)

    # head weight.T, zero-padded to a lane-dense multiple of 128 classes
    c_pad = ((num_classes + 127) // 128) * 128
    head_w = nrm(keys[2], (width, num_classes)).astype(jnp.bfloat16)
    params['head_w_pad'] = (jnp.zeros((width, c_pad), jnp.bfloat16)
                            .at[:, :num_classes].set(head_w))
    params['head_b_pad'] = jnp.zeros((1, c_pad), jnp.float32)
    return params


if __name__ == "__main__":
    # x: (batch, batch_seq_len, input_dim); reduce_ratio=1, token_kernel=3
    B, SEQ, INPUT_DIM = 2, 8, 16
    WIDTH, LAYERS, HEADS, NUM_CLASSES = 32, 2, 4, 5

    key = jax.random.PRNGKey(0)
    kx, kp = jax.random.split(key)
    x = jax.random.normal(kx, (B, SEQ, INPUT_DIM), dtype=jnp.float32)
    params = init_params(kp, input_dim=INPUT_DIM, width=WIDTH, layers=LAYERS,
                         num_classes=NUM_CLASSES, seq_len=SEQ)

    logits = clipfcls_forward(x, params, num_heads=HEADS)
    logits = jax.block_until_ready(logits)

    assert logits.shape == (B, NUM_CLASSES), logits.shape
    assert bool(jnp.all(jnp.isfinite(logits)))
    print("KERNEL_OK")
</pallas_src>

<mosaic_0001>
module attributes {stable_mosaic.version = 11 : i64} {
  func.func @_embed_kernel(%arg0: i32, %arg1: memref<1x8x16xf32, #tpu.memory_space<vmem>>, %arg2: memref<48x32xbf16, #tpu.memory_space<vmem>>, %arg3: memref<1x32xf32, #tpu.memory_space<vmem>>, %arg4: memref<1x32xf32, #tpu.memory_space<vmem>>, %arg5: memref<10x32xf32, #tpu.memory_space<vmem>>, %arg6: memref<1x10x32xf32, #tpu.memory_space<vmem>>) attributes {dimension_semantics = [#tpu.dimension_semantics<parallel>], iteration_bounds = array<i64: 2>, scalar_prefetch = 0 : i64, scratch_operands = 0 : i64, tpu.core_type = #tpu.core_type<tc>, window_params = [{transform_indices = @transform_0, window_bounds = array<i64: 1, 8, 16>}, {pipeline_mode = #tpu.pipeline_mode<synchronous>, transform_indices = @transform_1, window_bounds = array<i64: 48, 32>}, {pipeline_mode = #tpu.pipeline_mode<synchronous>, transform_indices = @transform_2, window_bounds = array<i64: 1, 32>}, {pipeline_mode = #tpu.pipeline_mode<synchronous>, transform_indices = @transform_3, window_bounds = array<i64: 1, 32>}, {pipeline_mode = #tpu.pipeline_mode<synchronous>, transform_indices = @transform_4, window_bounds = array<i64: 10, 32>}, {transform_indices = @transform_5, window_bounds = array<i64: 1, 10, 32>}]} {
    %c0 = arith.constant 0 : index
    %c0_0 = arith.constant 0 : index
    %c0_1 = arith.constant 0 : index
    %0 = vector.load %arg1[%c0, %c0_0, %c0_1] : memref<1x8x16xf32, #tpu.memory_space<vmem>>, vector<1x8x16xf32>
    %1 = vector.extract_strided_slice %0 {offsets = [0, 7, 0], sizes = [1, 1, 16], strides = [1, 1, 1]} : vector<1x8x16xf32> to vector<1x1x16xf32>
    %2 = vector.extract_strided_slice %0 {offsets = [0, 0, 0], sizes = [1, 7, 16], strides = [1, 1, 1]} : vector<1x8x16xf32> to vector<1x7x16xf32>
    %3 = tpu.concatenate %1, %2 in 1 : vector<1x1x16xf32>, vector<1x7x16xf32> -> vector<1x8x16xf32>
    %4 = vector.extract_strided_slice %0 {offsets = [0, 1, 0], sizes = [1, 7, 16], strides = [1, 1, 1]} : vector<1x8x16xf32> to vector<1x7x16xf32>
    %5 = vector.extract_strided_slice %0 {offsets = [0, 0, 0], sizes = [1, 1, 16], strides = [1, 1, 1]} : vector<1x8x16xf32> to vector<1x1x16xf32>
    %6 = tpu.concatenate %4, %5 in 1 : vector<1x7x16xf32>, vector<1x1x16xf32> -> vector<1x8x16xf32>
    %7 = tpu.concatenate %3, %0, %6 in 2 : vector<1x8x16xf32>, vector<1x8x16xf32>, vector<1x8x16xf32> -> vector<1x8x48xf32>
    %8 = arith.truncf %7 : vector<1x8x48xf32> to vector<1x8x48xbf16>
    %9 = vector.shape_cast %8 : vector<1x8x48xbf16> to vector<8x48xbf16>
    %c0_2 = arith.constant 0 : index
    %c0_3 = arith.constant 0 : index
    %10 = vector.load %arg2[%c0_2, %c0_3] : memref<48x32xbf16, #tpu.memory_space<vmem>>, vector<48x32xbf16>
    %cst = arith.constant dense<0.000000e+00> : vector<8x32xf32>
    %11 = tpu.matmul %9, %10, %cst {dimension_numbers = #tpu.dot_dimension_numbers<[1], [0], [0], [1], [0, 0, 1, 1], [], []>} : vector<8x48xbf16>, vector<48x32xbf16>, vector<8x32xf32> -> vector<8x32xf32>
    %12 = vector.shape_cast %11 : vector<8x32xf32> to vector<1x8x32xf32>
    %c0_4 = arith.constant 0 : index
    %c0_5 = arith.constant 0 : index
    %13 = vector.load %arg5[%c0_4, %c0_5] : memref<10x32xf32, #tpu.memory_space<vmem>>, vector<10x32xf32>
    %14 = vector.extract_strided_slice %13 {offsets = [1, 0], sizes = [8, 32], strides = [1, 1]} : vector<10x32xf32> to vector<8x32xf32>
    %15 = vector.shape_cast %14 : vector<8x32xf32> to vector<1x8x32xf32>
    %16 = arith.addf %12, %15 : vector<1x8x32xf32>
    %c0_6 = arith.constant 0 : index
    %c1 = arith.constant 1 : index
    %c0_7 = arith.constant 0 : index
    %17 = vector.load %arg6[%c0_6, %c1, %c0_7] : memref<1x10x32xf32, #tpu.memory_space<vmem>>, vector<1x8x32xf32>
    tpu.vector_store %arg6[%c0_6, %c1, %c0_7], %16 {strides = array<i32>} : memref<1x10x32xf32, #tpu.memory_space<vmem>>, vector<1x8x32xf32>,
    %c0_8 = arith.constant 0 : index
    %c0_9 = arith.constant 0 : index
    %18 = vector.load %arg3[%c0_8, %c0_9] : memref<1x32xf32, #tpu.memory_space<vmem>>, vector<1x32xf32>
    %19 = vector.extract_strided_slice %13 {offsets = [0, 0], sizes = [1, 32], strides = [1, 1]} : vector<10x32xf32> to vector<1x32xf32>
    %20 = arith.addf %18, %19 : vector<1x32xf32>
    %21 = vector.shape_cast %20 : vector<1x32xf32> to vector<1x1x32xf32>
    %c0_10 = arith.constant 0 : index
    %c0_11 = arith.constant 0 : index
    %c0_12 = arith.constant 0 : index
    %22 = vector.load %arg6[%c0_10, %c0_11, %c0_12] : memref<1x10x32xf32, #tpu.memory_space<vmem>>, vector<1x1x32xf32>
    tpu.vector_store %arg6[%c0_10, %c0_11, %c0_12], %21 {strides = array<i32>} : memref<1x10x32xf32, #tpu.memory_space<vmem>>, vector<1x1x32xf32>,
    %c0_13 = arith.constant 0 : index
    %c0_14 = arith.constant 0 : index
    %23 = vector.load %arg4[%c0_13, %c0_14] : memref<1x32xf32, #tpu.memory_space<vmem>>, vector<1x32xf32>
    %24 = vector.extract_strided_slice %13 {offsets = [9, 0], sizes = [1, 32], strides = [1, 1]} : vector<10x32xf32> to vector<1x32xf32>
    %25 = arith.addf %23, %24 : vector<1x32xf32>
    %26 = vector.shape_cast %25 : vector<1x32xf32> to vector<1x1x32xf32>
    %c0_15 = arith.constant 0 : index
    %c9 = arith.constant 9 : index
    %c0_16 = arith.constant 0 : index
    %27 = vector.load %arg6[%c0_15, %c9, %c0_16] : memref<1x10x32xf32, #tpu.memory_space<vmem>>, vector<1x1x32xf32>
    tpu.vector_store %arg6[%c0_15, %c9, %c0_16], %26 {strides = array<i32>} : memref<1x10x32xf32, #tpu.memory_space<vmem>>, vector<1x1x32xf32>,
    return
  }
  func.func @transform_0(%arg0: i32) -> (i32, i32, i32) {
    %c0_i32 = arith.constant 0 : i32
    %c0_i32_0 = arith.constant 0 : i32
    %c0_i32_1 = arith.constant 0 : i32
    return %arg0, %c0_i32, %c0_i32_0 : i32, i32, i32
  }
  func.func @transform_1(%arg0: i32) -> (i32, i32) {
    %c0_i32 = arith.constant 0 : i32
    %c0_i32_0 = arith.constant 0 : i32
    %c0_i32_1 = arith.constant 0 : i32
    return %c0_i32, %c0_i32_0 : i32, i32
  }
  func.func @transform_2(%arg0: i32) -> (i32, i32) {
    %c0_i32 = arith.constant 0 : i32
    %c0_i32_0 = arith.constant 0 : i32
    %c0_i32_1 = arith.constant 0 : i32
    return %c0_i32, %c0_i32_0 : i32, i32
  }
  func.func @transform_3(%arg0: i32) -> (i32, i32) {
    %c0_i32 = arith.constant 0 : i32
    %c0_i32_0 = arith.constant 0 : i32
    %c0_i32_1 = arith.constant 0 : i32
    return %c0_i32, %c0_i32_0 : i32, i32
  }
  func.func @transform_4(%arg0: i32) -> (i32, i32) {
    %c0_i32 = arith.constant 0 : i32
    %c0_i32_0 = arith.constant 0 : i32
    %c0_i32_1 = arith.constant 0 : i32
    return %c0_i32, %c0_i32_0 : i32, i32
  }
  func.func @transform_5(%arg0: i32) -> (i32, i32, i32) {
    %c0_i32 = arith.constant 0 : i32
    %c0_i32_0 = arith.constant 0 : i32
    %c0_i32_1 = arith.constant 0 : i32
    return %arg0, %c0_i32, %c0_i32_0 : i32, i32, i32
  }
}

</mosaic_0001>

<bundles_post_ra>
// kernel: tpu_custom_call.1
= control target key start
LH: loop header
LB: loop body
LE: loop exit
PB: predicated region body
PF: predicated region fallthrough
CT: control target
= control target key end

     0   :  { %s489_s18 = smov 0   ;;  %s533_s0 = inlined_call_operand.vmem [shape: f32[2,8,16], index: 0, kind: input, shape index: {}]   ;;  %s534_s1 = inlined_call_operand.vmem [shape: bf16[48,32], index: 1, kind: input, shape index: {}]   ;;  %s535_s2 = inlined_call_operand.vmem [shape: f32[1,32], index: 2, kind: input, shape index: {}]   ;;  %s536_s3 = inlined_call_operand.vmem [shape: f32[1,32], index: 3, kind: input, shape index: {}]   ;;  %s537_s4 = inlined_call_operand.vmem [shape: f32[10,32], index: 4, kind: input, shape index: {}]   ;;  %s538_s5 = inlined_call_operand.vmem [shape: f32[2,10,32], index: 5, kind: output, shape index: {}]  }
   0x1 LB: > { %s401_s19 = sadd.s32 4294967295, %s452_s18   ;;  %p405_p0 = scmp.ge.s32.totalorder %s452_s18, 1  ;;  %s452_s18 = sphi %s489_s18, %s15_s18  }
   0x2   : > { %p186_p1 = scmp.lt.s32.totalorder %s452_s18, 3 }
   0x4   : > { %p187_p2 = pnand %p405_p0, %p186_p1 }
   0x5   : > { %p213_p3 = scmp.lt.s32.totalorder (!%p187_p2), %s401_s19, 1  ;;  %s456_s30 = smov (!%p187_p2), 16  }
   0x6   : > { %190 = sbr.rel (%p187_p2) target bundleno = 336 (0x150), region = 40  ;;  %s457_s6 = smov (!%p187_p2), 32  }
   0xb   : > { %v443_v0 = vld [vmem:[%s534_s1 + $0x10] sm:$0xff]   ;;  %v454_v1 = vmov 0.0   ;;  %s540_s19 = smov (!%p213_p3, %s401_s19), 1  ;;  %v444_v2 = vld [vmem:[%s534_s1 + $0x8] sm:$0xff]   ;;  %vm455_vm0 = vmmov 0   ;;  %v445_v4 = vld [vmem:[%s534_s1] sm:$0xff]   ;;  %v331_v14 = vlaneseq }
   0xc   : > { %420 = vmatprep.subr.bf16.mxu0 %v454_v1  ;;  %s406_s24 = sshll.u32 %s540_s19, 3  ;;  %426 = vmatprep.mubr.msk.bf16.mxu0 %vm455_vm0, %v454_v1  ;;  %vm240_vm1 = vcmask 130048   ;;  %vm242_vm2 = vcmask 261120   ;;  %vm269_vm3 = vcmask 392192   ;;  %v458_v12 = vmov 1966171168  }
   0xd   : > { %421 = vmatpush3.bf16.msra.mxu0 %v443_v0  ;;  %s216_s27 = scalar_lea.vmem %s533_s0, %s406_s24  ;;  %v329_v13 = vunpack.c.l.s4 %v458_v12  ;;  %v332_v16 = vshrl.u32 %v331_v14, 7  ;;  %vm231_vm4 = vcmask 1046528   ;;  %v313_v18 = vld [vmem:[%s537_s4] sm:$0xff]  ;;  %v314_v19 = vld [vmem:[%s537_s4 + $0x8] sm:$0x3]  ;;  %s415_s11 = sshll.u32 %s540_s19, 4 }
   0xe   : > { %422 = vmatprep.subr.bf16.mxu0 %v454_v1  ;;  %v223_v3 = vld [vmem:[%s216_s27] sm:$0xff]  ;;  %v317_v20 = vrot.slane %v313_v18, 1  ;;  %v318_v21 = vrot.slane %v314_v19, 1  ;;  %vm325_vm5 = vcmask 253952   ;;  %s221_s20 = scalar_lea.vmem %s538_s5, %s415_s11 }
   0xf   : > { %233 = vrot.lane.b32.xlu0 %v223_v3, %s456_s30  ;;  %v229_v5 = vrot.slane %v223_v3, 1  ;;  %v225_v6 = vrot.slane %v223_v3, 7  ;;  %v330_v15 = vunpack.c.0.s8 %v329_v13  ;;  %v323_v26 = vld [vmem:[%s535_s2] sm:$0x1] }
  0x10   : > { %v319_v23 = vsel %vm231_vm4, %v317_v20, %v318_v21  ;;  %v327_v27 = vld [vmem:[%s536_s3] sm:$0x1]  ;;  %v324_v28 = vadd.f32 %v323_v26, %v313_v18 }
  0x11   : > { %423 = vmatpush3.bf16.msra.mxu0 %v444_v2  ;;  %v333_v17 = vsub.s32 %v330_v15, %v332_v16 }
  0x12   : > { %424 = vmatprep.subr.bf16.mxu0 %v454_v1  ;;  %326 = vst.msk [vmem:[%s221_s20] sm:$0x1] %vm325_vm5, %v324_v28 }
  0x13   : > { %237 = vrot.lane.b32.xlu0 %v229_v5, %s457_s6  ;;  %v334_v22 = vrot.slane %v314_v19, %v333_v17 }
  0x15   : > { %425 = vmatpush3.bf16.msra.mxu0 %v445_v4  ;;  %v335_v24 = vcombine.high %v334_v22, %v334_v22 }
  0x17   : > { %v342_v25 = vrot.slane %v335_v24, %v333_v17 }
  0x19   : > { %v344_v29 = vadd.f32 %v342_v25, %v327_v27 }
  0x1b   : > { %345 = vst.msk [vmem:[%s221_s20 + $0x9] sm:$0x1] %vm325_vm5, %v344_v29 }
  0x81   : > { %v234_v7 = vpop.permute.xlu0 %233 }
  0x82   : > { %v241_v8 = vsel %vm240_vm1, %v225_v6, %v234_v7 }
  0x85   : > { %v238_v9 = vpop.permute.xlu0 %237 }
  0x86   : > { %v243_v10 = vsel %vm242_vm2, %v241_v8, %v238_v9 }
  0x87   : > { %v244_v11 = vpack.c.bf16 %v243_v10, %v243_v10 }
  0x89   : > { %427 = vmatmul.mubr.msk.bf16.vlgmr.msra.gmra.mxu0 %vm269_vm3, %v244_v11 }
 0x149   : > { %v307_v30 = vpop.f32.mrf.mxu0 }
 0x14a   : > { %v321_v31 = vadd.f32 %v319_v23, %v307_v30 }
 0x14b   : > { %v428_v32 = vpop.f32.mrf.mxu0 }
 0x14c   : > { %322 = vst.msk [vmem:[%s221_s20 + $0x1] sm:$0xff] %vm242_vm2, %v321_v31 }
 0x14d   : > { %v310_v33 = vpop.f32.mrf.mxu0 }
 0x14f   : > { %v429_v34 = vpop.f32.mrf.mxu0 }
 0x150 PF: > { %s15_s18 = sadd.s32 1, %s452_s18  }
 0x151   : > { %p12_p4 = scmp.ge.s32.totalorder %s15_s18, 4  }
 0x153   :  { %14 = sbr.rel (!%p12_p4) target bundleno = 1 (0x1), region = 70 }

</bundles_post_ra>
